<compile_context>
chip_gen: v7x
topology: tpu7x:2x2x1
jax: 0.10.0
libtpu: 0.0.40
codegen_flags: <defaults>
</compile_context>

<pallas_src>
import functools

import jax
import jax.numpy as jnp
from jax.experimental import pallas as pl
from jax.experimental.pallas import tpu as pltpu


# ----------------------------- helpers ---------------------------------------

def _round_up(x, m):
    return (x + m - 1) // m * m


def _pick_tile(dim_padded, preferred):
    # dim_padded is a multiple of 128; return the largest multiple of 128 that is
    # <= preferred and divides dim_padded.
    t = min(preferred, dim_padded)
    t = (t // 128) * 128
    while dim_padded % t != 0:
        t -= 128
    return t


def build_mean_adjacency(edge_index, num_nodes):
    # Plain-JAX glue: scatter edges into a dense adjacency and row-normalize
    # (A[i, j] = 1/deg_in(i) if edge j->i else 0; zero-degree rows stay 0, as in PyG mean aggr).
    src = edge_index[0]
    dst = edge_index[1]
    a = jnp.zeros((num_nodes, num_nodes), jnp.float32).at[dst, src].add(1.0)
    deg = a.sum(axis=1, keepdims=True)
    return a / jnp.maximum(deg, 1.0)


# ----------------------------- kernels ----------------------------------------

def _proj_kernel(x_ref, w_ref, b_ref, p_ref, acc_ref):
    # P[i_block] = X[i_block] @ [Wl | Wr] + [0 | b]   (reduction over feature axis)
    k = pl.program_id(1)

    @pl.when(k == 0)
    def _():
        acc_ref[...] = jnp.zeros_like(acc_ref)

    acc_ref[...] += jnp.dot(x_ref[...], w_ref[...],
                            preferred_element_type=jnp.float32)

    @pl.when(k == pl.num_programs(1) - 1)
    def _():
        p_ref[...] = (acc_ref[...] + b_ref[...]).astype(p_ref.dtype)


def _agg_combine_kernel(a_ref, xwl_ref, xwr_ref, o_ref, acc_ref, *, apply_relu):
    # Y[i_block] = sum_k A[i_block, k_block] @ XWl[k_block]  + (XWr + b)[i_block]
    k = pl.program_id(1)

    @pl.when(k == 0)
    def _():
        acc_ref[...] = jnp.zeros_like(acc_ref)

    acc_ref[...] += jnp.dot(a_ref[...], xwl_ref[...],
                            preferred_element_type=jnp.float32)

    @pl.when(k == pl.num_programs(1) - 1)
    def _():
        y = acc_ref[...] + xwr_ref[...].astype(jnp.float32)
        if apply_relu:
            y = jnp.maximum(y, 0.0)
        o_ref[...] = y.astype(o_ref.dtype)


# ----------------------------- pallas_call wrappers ----------------------------

def _project(x_p, w_cat, b_cat, *, tm_pref=256, tk_pref=512):
    # x_p: [Np, Fp] bf16, w_cat: [Fp, 2Hp] bf16, b_cat: [1, 2Hp] f32 -> [Np, 2Hp] bf16
    n_p, f_p = x_p.shape
    h2 = w_cat.shape[1]
    tm = _pick_tile(n_p, tm_pref)
    tk = _pick_tile(f_p, tk_pref)
    grid = (n_p // tm, f_p // tk)
    return pl.pallas_call(
        _proj_kernel,
        out_shape=jax.ShapeDtypeStruct((n_p, h2), jnp.bfloat16),
        grid_spec=pltpu.PrefetchScalarGridSpec(
            num_scalar_prefetch=0,
            grid=grid,
            in_specs=[
                pl.BlockSpec((tm, tk), lambda i, k: (i, k)),   # X row/K tile
                pl.BlockSpec((tk, h2), lambda i, k: (k, 0)),   # [Wl|Wr] K tile (resident over i)
                pl.BlockSpec((1, h2), lambda i, k: (0, 0)),    # bias, resident
            ],
            out_specs=pl.BlockSpec((tm, h2), lambda i, k: (i, 0)),
            scratch_shapes=[pltpu.VMEM((tm, h2), jnp.float32)],
        ),
        compiler_params=pltpu.CompilerParams(
            dimension_semantics=("parallel", "arbitrary")),
    )(x_p, w_cat, b_cat)


def _aggregate_combine(a_p, p, *, apply_relu, out_dtype, tm_pref=256, tk_pref=512):
    # a_p: [Np, Np] bf16, p: [Np, 2Hp] bf16 (cols [0:Hp]=X@Wl, cols [Hp:2Hp]=X@Wr+b)
    n_p = a_p.shape[0]
    h_p = p.shape[1] // 2
    tm = _pick_tile(n_p, tm_pref)
    tk = _pick_tile(n_p, tk_pref)
    grid = (n_p // tm, n_p // tk)
    kernel = functools.partial(_agg_combine_kernel, apply_relu=apply_relu)
    return pl.pallas_call(
        kernel,
        out_shape=jax.ShapeDtypeStruct((n_p, h_p), out_dtype),
        grid_spec=pltpu.PrefetchScalarGridSpec(
            num_scalar_prefetch=0,
            grid=grid,
            in_specs=[
                pl.BlockSpec((tm, tk), lambda i, k: (i, k)),   # A tile
                pl.BlockSpec((tk, h_p), lambda i, k: (k, 0)),  # X@Wl rows (left half of P)
                pl.BlockSpec((tm, h_p), lambda i, k: (i, 1)),  # X@Wr+b rows (right half of P)
            ],
            out_specs=pl.BlockSpec((tm, h_p), lambda i, k: (i, 0)),
            scratch_shapes=[pltpu.VMEM((tm, h_p), jnp.float32)],
        ),
        compiler_params=pltpu.CompilerParams(
            dimension_semantics=("parallel", "arbitrary")),
    )(a_p, p, p)


# ----------------------------- forward -----------------------------------------

def graphsage_forward(x, edge_index, params):
    n, f = x.shape
    hidden = params["wl2"].shape[1]
    a = build_mean_adjacency(edge_index, n)

    # Pad everything to lane-dense, (8,128)-aligned shapes; cast matmul operands to bf16.
    n_p = _round_up(n, 128)
    f_p = _round_up(f, 128)
    h_p = _round_up(hidden, 128)

    a_p = jnp.zeros((n_p, n_p), jnp.bfloat16).at[:n, :n].set(a.astype(jnp.bfloat16))
    x_p = jnp.zeros((n_p, f_p), jnp.bfloat16).at[:n, :f].set(x.astype(jnp.bfloat16))

    def pad_w(w, rows, cols):
        return jnp.zeros((rows, cols), jnp.bfloat16).at[:w.shape[0], :w.shape[1]].set(
            w.astype(jnp.bfloat16))

    # Fused projection weights [Wl | Wr]; the (lin_l) bias is folded into the self
    # (Wr) half so it is added exactly once per node and never multiplied by A.
    w1 = jnp.concatenate([pad_w(params["wl1"], f_p, h_p),
                          pad_w(params["wr1"], f_p, h_p)], axis=1)     # [Fp, 2Hp]
    w2 = jnp.concatenate([pad_w(params["wl2"], h_p, h_p),
                          pad_w(params["wr2"], h_p, h_p)], axis=1)     # [Hp, 2Hp]
    b1 = jnp.zeros((1, 2 * h_p), jnp.float32).at[0, h_p:h_p + hidden].set(
        params["b1"].reshape(-1))
    b2 = jnp.zeros((1, 2 * h_p), jnp.float32).at[0, h_p:h_p + hidden].set(
        params["b2"].reshape(-1))

    # ---- SAGEConv layer 1 ----
    p1 = _project(x_p, w1, b1)                                            # [Np, 2Hp] bf16
    h1 = _aggregate_combine(a_p, p1, apply_relu=True,
                            out_dtype=jnp.bfloat16)                      # [Np, Hp] bf16
    # ---- SAGEConv layer 2 ----
    p2 = _project(h1, w2, b2)
    out = _aggregate_combine(a_p, p2, apply_relu=False,
                             out_dtype=jnp.float32)                      # [Np, Hp] f32

    return out[:n, :hidden]


# ----------------------------- init + reference --------------------------------

def init_params(key, in_features, hidden):
    # Deterministic synthetic init (SAGEConv: lin_l Linear(in, out, bias=True),
    # lin_r Linear(in, out, bias=False)).  Weights stored transposed [in, out].
    ks = jax.random.split(key, 6)
    s1 = 1.0 / jnp.sqrt(in_features)
    s2 = 1.0 / jnp.sqrt(hidden)
    return {
        "wl1": jax.random.uniform(ks[0], (in_features, hidden), jnp.float32, -s1, s1),
        "b1":  jax.random.uniform(ks[1], (1, hidden), jnp.float32, -s1, s1),
        "wr1": jax.random.uniform(ks[2], (in_features, hidden), jnp.float32, -s1, s1),
        "wl2": jax.random.uniform(ks[3], (hidden, hidden), jnp.float32, -s2, s2),
        "b2":  jax.random.uniform(ks[4], (1, hidden), jnp.float32, -s2, s2),
        "wr2": jax.random.uniform(ks[5], (hidden, hidden), jnp.float32, -s2, s2),
    }


def _reference(x, edge_index, params):
    # Pure-JAX f32 reference for sanity checking.
    a = build_mean_adjacency(edge_index, x.shape[0])
    h1 = jnp.maximum(a @ x @ params["wl1"] + params["b1"] + x @ params["wr1"], 0.0)
    return a @ h1 @ params["wl2"] + params["b2"] + h1 @ params["wr2"]


if __name__ == "__main__":
    key = jax.random.PRNGKey(0)
    k_x, k_e, k_p = jax.random.split(key, 3)

    num_nodes = 16
    in_features = 16
    hidden = 32
    num_edges = 40

    x = jax.random.normal(k_x, (num_nodes, in_features), jnp.float32)
    edge_index = jax.random.randint(k_e, (2, num_edges), 0, num_nodes, jnp.int32)
    params = init_params(k_p, in_features, hidden)

    out = graphsage_forward(x, edge_index, params)
    jax.block_until_ready(out)

    ref = _reference(x, edge_index, params)
    assert out.shape == (num_nodes, hidden)
    # bf16 matmul operands (f32 accumulation) -> loosened tolerance vs f32 reference.
    assert jnp.allclose(out, ref, atol=5e-2, rtol=5e-2)

    print("KERNEL_OK")
</pallas_src>

<mosaic_0001>
module attributes {stable_mosaic.version = 11 : i64} {
  func.func @_proj_kernel(%arg0: i32, %arg1: i32, %arg2: memref<128x128xbf16, #tpu.memory_space<vmem>>, %arg3: memref<128x256xbf16, #tpu.memory_space<vmem>>, %arg4: memref<1x256xf32, #tpu.memory_space<vmem>>, %arg5: memref<128x256xbf16, #tpu.memory_space<vmem>>, %arg6: memref<128x256xf32, #tpu.memory_space<vmem>>) attributes {dimension_semantics = [#tpu.dimension_semantics<parallel>, #tpu.dimension_semantics<arbitrary>], iteration_bounds = array<i64: 1, 1>, scalar_prefetch = 0 : i64, scratch_operands = 1 : i64, tpu.core_type = #tpu.core_type<tc>, window_params = [{transform_indices = @transform_0, window_bounds = array<i64: 128, 128>}, {transform_indices = @transform_1, window_bounds = array<i64: 128, 256>}, {pipeline_mode = #tpu.pipeline_mode<synchronous>, transform_indices = @transform_2, window_bounds = array<i64: 1, 256>}, {transform_indices = @transform_3, window_bounds = array<i64: 128, 256>}]} {
    %c0_i32 = arith.constant 0 : i32
    %0 = arith.cmpi eq, %arg1, %c0_i32 : i32
    %1 = arith.extui %0 : i1 to i32
    %c0_i32_0 = arith.constant 0 : i32
    %2 = arith.cmpi ne, %1, %c0_i32_0 : i32
    scf.if %2 {
      %cst_10 = arith.constant 0.000000e+00 : f32
      %12 = vector.broadcast %cst_10 : f32 to vector<128x256xf32>
      %c0_11 = arith.constant 0 : index
      %c0_12 = arith.constant 0 : index
      %13 = vector.load %arg6[%c0_11, %c0_12] : memref<128x256xf32, #tpu.memory_space<vmem>>, vector<128x256xf32>
      tpu.vector_store %arg6[%c0_11, %c0_12], %12 {strides = array<i32>} : memref<128x256xf32, #tpu.memory_space<vmem>>, vector<128x256xf32>,
    } else {
    }
    %c0 = arith.constant 0 : index
    %c0_1 = arith.constant 0 : index
    %3 = vector.load %arg6[%c0, %c0_1] : memref<128x256xf32, #tpu.memory_space<vmem>>, vector<128x256xf32>
    %c0_2 = arith.constant 0 : index
    %c0_3 = arith.constant 0 : index
    %4 = vector.load %arg2[%c0_2, %c0_3] : memref<128x128xbf16, #tpu.memory_space<vmem>>, vector<128x128xbf16>
    %c0_4 = arith.constant 0 : index
    %c0_5 = arith.constant 0 : index
    %5 = vector.load %arg3[%c0_4, %c0_5] : memref<128x256xbf16, #tpu.memory_space<vmem>>, vector<128x256xbf16>
    %cst = arith.constant dense<0.000000e+00> : vector<128x256xf32>
    %6 = tpu.matmul %4, %5, %cst {dimension_numbers = #tpu.dot_dimension_numbers<[1], [0], [0], [1], [0, 0, 1, 1], [], []>} : vector<128x128xbf16>, vector<128x256xbf16>, vector<128x256xf32> -> vector<128x256xf32>
    %7 = arith.addf %3, %6 : vector<128x256xf32>
    %c0_6 = arith.constant 0 : index
    %c0_7 = arith.constant 0 : index
    %8 = vector.load %arg6[%c0_6, %c0_7] : memref<128x256xf32, #tpu.memory_space<vmem>>, vector<128x256xf32>
    tpu.vector_store %arg6[%c0_6, %c0_7], %7 {strides = array<i32>} : memref<128x256xf32, #tpu.memory_space<vmem>>, vector<128x256xf32>,
    %c0_i32_8 = arith.constant 0 : i32
    %9 = arith.cmpi eq, %arg1, %c0_i32_8 : i32
    %10 = arith.extui %9 : i1 to i32
    %c0_i32_9 = arith.constant 0 : i32
    %11 = arith.cmpi ne, %10, %c0_i32_9 : i32
    scf.if %11 {
      %c0_10 = arith.constant 0 : index
      %c0_11 = arith.constant 0 : index
      %12 = vector.load %arg6[%c0_10, %c0_11] : memref<128x256xf32, #tpu.memory_space<vmem>>, vector<128x256xf32>
      %c0_12 = arith.constant 0 : index
      %c0_13 = arith.constant 0 : index
      %13 = vector.load %arg4[%c0_12, %c0_13] : memref<1x256xf32, #tpu.memory_space<vmem>>, vector<1x256xf32>
      %14 = vector.broadcast %13 : vector<1x256xf32> to vector<128x256xf32>
      %15 = arith.addf %12, %14 : vector<128x256xf32>
      %16 = arith.truncf %15 : vector<128x256xf32> to vector<128x256xbf16>
      %c0_14 = arith.constant 0 : index
      %c0_15 = arith.constant 0 : index
      %17 = vector.load %arg5[%c0_14, %c0_15] : memref<128x256xbf16, #tpu.memory_space<vmem>>, vector<128x256xbf16>
      tpu.vector_store %arg5[%c0_14, %c0_15], %16 {strides = array<i32>} : memref<128x256xbf16, #tpu.memory_space<vmem>>, vector<128x256xbf16>,
    } else {
    }
    return
  }
  func.func @transform_0(%arg0: i32, %arg1: i32) -> (i32, i32) {
    %c0_i32 = arith.constant 0 : i32
    return %arg0, %arg1 : i32, i32
  }
  func.func @transform_1(%arg0: i32, %arg1: i32) -> (i32, i32) {
    %c0_i32 = arith.constant 0 : i32
    %c0_i32_0 = arith.constant 0 : i32
    return %arg1, %c0_i32 : i32, i32
  }
  func.func @transform_2(%arg0: i32, %arg1: i32) -> (i32, i32) {
    %c0_i32 = arith.constant 0 : i32
    %c0_i32_0 = arith.constant 0 : i32
    %c0_i32_1 = arith.constant 0 : i32
    return %c0_i32, %c0_i32_0 : i32, i32
  }
  func.func @transform_3(%arg0: i32, %arg1: i32) -> (i32, i32) {
    %c0_i32 = arith.constant 0 : i32
    %c0_i32_0 = arith.constant 0 : i32
    return %arg0, %c0_i32 : i32, i32
  }
}

</mosaic_0001>

<bundles_post_ra>
// kernel: tpu_custom_call.1
= control target key start
LH: loop header
LB: loop body
LE: loop exit
PB: predicated region body
PF: predicated region fallthrough
CT: control target
= control target key end

     0   :  { %8 = vsyncpa [#allocation4], 0  ;;  %s959_s0 = inlined_call_operand.hbm [shape: bf16[128,128], index: 0, kind: input, shape index: {}]   ;;  %s960_s1 = inlined_call_operand.hbm [shape: bf16[128,256], index: 1, kind: input, shape index: {}]   ;;  %s961_s2 = inlined_call_operand.vmem [shape: f32[1,256], index: 2, kind: input, shape index: {}]   ;;  %s962_s3 = inlined_call_operand.hbm [shape: bf16[128,256], index: 3, kind: output, shape index: {}]  }
   0x1   :  { %9 = vsyncpa [#allocation7], 0 }
   0x2   :  { %10 = vsyncpa [#allocation5], 0  ;;  %s842_s12 = smov [#allocation3]   ;;  %s770_s16 = scalar_lea.hbm %s959_s0, 1024 }
   0x3   :  { %s16_s13 = sshll.u32 %s842_s12, 4  ;;  %p771_p0 = scmp.ne.s32.totalorder %s959_s0, %s770_s16  ;;  %s17_s13 = int_to_ptr.vmem [resolvable:$true] %s16_s13 }
   0x4   :  { %p774_p1 = scmp.lt.u32.totalorder %s770_s16, %s959_s0 }
   0x6   :  { %p776_p2 = pnand %p774_p1, %p771_p0 }
   0x8   :  { %779 = shalt.err (!%p776_p2)
}
   0x9   :  { %s780_s21 = scalar_lea.vmem %s17_s13, 1024  ;;  %p785_p4 = scmp.lt.s32.totalorder %s17_s13, %s17_s13 }
   0xa   :  { %p781_p3 = scmp.ne.s32.totalorder %s17_s13, %s780_s21  ;;  %p786_p5 = scmp.lt.s32.totalorder %s780_s21, %s780_s21 }
   0xc   :  { %p787_p6 = por %p786_p5, %p785_p4 }
   0xe   :  { %p788_p7 = pnand %p787_p6, %p781_p3 }
  0x10   :  { %791 = shalt.err (!%p788_p7)
}
  0x11   :  { %s843_s22 = smov 64   ;;  %s844_s23 = smov 4  }
  0x12   :  { %22 = dma.hbm_to_vmem [thread:$0]  %s959_s0, 1024, %s17_s13, [#allocation4], %s843_s22, %s843_s22, %s844_s23  }
  0x13   :  { %s845_s26 = smov [#allocation6]   ;;  %s792_s30 = scalar_lea.hbm %s960_s1, 2048 }
  0x14   :  { %s28_s27 = sshll.u32 %s845_s26, 4  ;;  %p793_p8 = scmp.ne.s32.totalorder %s960_s1, %s792_s30  ;;  %s29_s27 = int_to_ptr.vmem [resolvable:$true] %s28_s27 }
  0x15   :  { %p796_p9 = scmp.lt.u32.totalorder %s792_s30, %s960_s1 }
  0x17   :  { %p798_p10 = pnand %p796_p9, %p793_p8 }
  0x19   :  { %801 = shalt.err (!%p798_p10)
}
  0x1a   :  { %s802_s8 = scalar_lea.vmem %s29_s27, 2048  ;;  %p807_p12 = scmp.lt.s32.totalorder %s29_s27, %s29_s27 }
  0x1b   :  { %p803_p11 = scmp.ne.s32.totalorder %s29_s27, %s802_s8  ;;  %p808_p13 = scmp.lt.s32.totalorder %s802_s8, %s802_s8 }
  0x1d   :  { %p809_p0 = por %p808_p13, %p807_p12 }
  0x1f   :  { %p810_p1 = pnand %p809_p0, %p803_p11 }
  0x21   :  { %813 = shalt.err (!%p810_p1)
}
  0x22   :  { %s846_s0 = smov 128   ;;  %s847_s9 = smov 8  }
  0x23   :  { %34 = dma.hbm_to_vmem [thread:$0]  %s960_s1, 2048, %s29_s27, [#allocation7], %s846_s0, %s846_s0, %s847_s9  }
  0x24   :  { %836 = dma.done.wait [#allocation4], 1024  }
  0x25   :  { %837 = vsyncadd [#allocation4], 4294966272 }
  0x26   :  { %838 = dma.done.wait [#allocation7], 2048  }
  0x27   :  { %839 = vsyncadd [#allocation7], 4294965248  ;;  %v848_v0 = vmov 0   ;;  %v738_v1 = vld [vmem:[#allocation6 + $0x4] ss:$8 sps:$4 sm:$0xff]   ;;  %v766_v21 = vld [vmem:[#allocation3 + $0x10] sm:$0xff]   ;;  %v486_v25 = vlaneseq }
  0x28   :  { %304 = vmatprep.mubr.bf16.mxu0 %v848_v0  ;;  %344 = vmatprep.mubr.bf16.mxu1 %v848_v0  ;;  %v740_v2 = vld [vmem:[#allocation6] ss:$8 sps:$4 sm:$0xff]   ;;  %v741_v3 = vld [vmem:[#allocation6 + $0x14] ss:$8 sps:$4 sm:$0xff]   ;;  %v743_v4 = vld [vmem:[#allocation6 + $0x10] ss:$8 sps:$4 sm:$0xff]  }
  0x29   :  { %272 = vmatprep.subr.bf16.mxu0 %v738_v1  ;;  %714 = vmatprep.subr.bf16.mxu1 %v738_v1  ;;  %v744_v5 = vld [vmem:[#allocation6 + $0x24] ss:$8 sps:$4 sm:$0xff]   ;;  %v746_v6 = vld [vmem:[#allocation6 + $0x20] ss:$8 sps:$4 sm:$0xff]   ;;  %v747_v7 = vld [vmem:[#allocation6 + $0x34] ss:$8 sps:$4 sm:$0xff]  }
  0x2a   :  { %273 = vmatpush1.bf16.msra.mxu0 %v740_v2  ;;  %722 = vmatpush1.bf16.msra.mxu1 %v740_v2  ;;  %v749_v8 = vld [vmem:[#allocation6 + $0x30] ss:$8 sps:$4 sm:$0xff]   ;;  %v750_v9 = vld [vmem:[#allocation6 + $0x44] ss:$8 sps:$4 sm:$0xff]   ;;  %v752_v10 = vld [vmem:[#allocation6 + $0x40] ss:$8 sps:$4 sm:$0xff]  }
  0x2b   :  { %274 = vmatprep.subr.bf16.mxu0 %v741_v3  ;;  %715 = vmatprep.subr.bf16.mxu1 %v741_v3  ;;  %v753_v11 = vld [vmem:[#allocation6 + $0x54] ss:$8 sps:$4 sm:$0xff]   ;;  %v755_v12 = vld [vmem:[#allocation6 + $0x50] ss:$8 sps:$4 sm:$0xff]   ;;  %v756_v13 = vld [vmem:[#allocation6 + $0x64] ss:$8 sps:$4 sm:$0xff]  }
  0x2c   :  { %v758_v14 = vld [vmem:[#allocation6 + $0x60] ss:$8 sps:$4 sm:$0xff]   ;;  %v759_v15 = vld [vmem:[#allocation6 + $0x74] ss:$8 sps:$4 sm:$0xff]   ;;  %v761_v16 = vld [vmem:[#allocation6 + $0x70] ss:$8 sps:$4 sm:$0xff]  }
  0x2d   :  { %v762_v17 = vld [vmem:[#allocation3] sm:$0xff]   ;;  %v764_v19 = vld [vmem:[#allocation3 + $0x8] sm:$0xff]   ;;  %v767_v22 = vld [vmem:[#allocation3 + $0x30] sm:$0xff]   ;;  %v487_v26 = vshrl.u32 %v486_v25, 7 }
  0x2e   :  { %275 = vmatpush1.bf16.msra.mxu0 %v743_v4  ;;  %723 = vmatpush1.bf16.msra.mxu1 %v743_v4  ;;  %v763_v18 = vld [vmem:[#allocation3 + $0x20] sm:$0xff]   ;;  %v765_v20 = vld [vmem:[#allocation3 + $0x28] sm:$0xff]   ;;  %v768_v23 = vld [vmem:[#allocation3 + $0x18] sm:$0xff]  }
  0x2f   :  { %276 = vmatprep.subr.bf16.mxu0 %v744_v5  ;;  %716 = vmatprep.subr.bf16.mxu1 %v744_v5  ;;  %v769_v24 = vld [vmem:[#allocation3 + $0x38] sm:$0xff]   ;;  %v488_v27 = vsub.s32 0, %v487_v26  ;;  %v484_v28 = vld [vmem:[%s961_s2] sm:$0x3]  ;;  %v492_v29 = vsub.s32 1, %v487_v26  ;;  %s849_s2 = smov [#allocation8]  }
  0x30   :  { %s645_s13 = sshll.u32 %s849_s2, 4  ;;  %s646_s13 = int_to_ptr.vmem [resolvable:$true] %s645_s13 }
  0x31   :  { %v908_v30 = vrot.slane %v484_v28, %v488_v27  ;;  %v910_v31 = vrot.slane %v484_v28, %v492_v29  ;;  %s814_s14 = scalar_lea.vmem %s646_s13, 2048  ;;  %p819_p3 = scmp.lt.s32.totalorder %s646_s13, %s646_s13 }
  0x32   :  { %277 = vmatpush1.bf16.msra.mxu0 %v746_v6  ;;  %724 = vmatpush1.bf16.msra.mxu1 %v746_v6  ;;  %p815_p2 = scmp.ne.s32.totalorder %s646_s13, %s814_s14  ;;  %p820_p4 = scmp.lt.s32.totalorder %s814_s14, %s814_s14 }
  0x33   :  { %278 = vmatprep.subr.bf16.mxu0 %v747_v7  ;;  %717 = vmatprep.subr.bf16.mxu1 %v747_v7 }
  0x34   :  { %p821_p5 = por %p820_p4, %p819_p3 }
  0x36   :  { %279 = vmatpush1.bf16.msra.mxu0 %v749_v8  ;;  %725 = vmatpush1.bf16.msra.mxu1 %v749_v8  ;;  %p822_p6 = pnand %p821_p5, %p815_p2 }
  0x37   :  { %280 = vmatprep.subr.bf16.mxu0 %v750_v9  ;;  %718 = vmatprep.subr.bf16.mxu1 %v750_v9 }
  0x3a   :  { %281 = vmatpush1.bf16.msra.mxu0 %v752_v10  ;;  %726 = vmatpush1.bf16.msra.mxu1 %v752_v10 }
  0x3b   :  { %282 = vmatprep.subr.bf16.mxu0 %v753_v11  ;;  %719 = vmatprep.subr.bf16.mxu1 %v753_v11 }
  0x3e   :  { %283 = vmatpush1.bf16.msra.mxu0 %v755_v12  ;;  %727 = vmatpush1.bf16.msra.mxu1 %v755_v12 }
  0x3f   :  { %284 = vmatprep.subr.bf16.mxu0 %v756_v13  ;;  %720 = vmatprep.subr.bf16.mxu1 %v756_v13 }
  0x42   :  { %285 = vmatpush1.bf16.msra.mxu0 %v758_v14  ;;  %728 = vmatpush1.bf16.msra.mxu1 %v758_v14 }
  0x43   :  { %286 = vmatprep.subr.bf16.mxu0 %v759_v15  ;;  %721 = vmatprep.subr.bf16.mxu1 %v759_v15 }
  0x46   :  { %287 = vmatpush1.bf16.msra.mxu0 %v761_v16  ;;  %729 = vmatpush1.bf16.msra.mxu1 %v761_v16 }
  0x49   :  { %305 = vmatmul.mubr.bf16.vlgmr.msra.gmra.mrb[0].mxu0 %v762_v17  ;;  %345 = vmatmul.mubr.bf16.vlgmr.msra.gmra.mrb[0].mxu1 %v763_v18 }
  0x4a   :  { %314 = vmatprep.mubr.bf16.mxu0 %v848_v0  ;;  %354 = vmatprep.mubr.bf16.mxu1 %v848_v0 }
  0x51   :  { %315 = vmatmul.mubr.bf16.gmra.mrb[4].mxu0 %v764_v19  ;;  %355 = vmatmul.mubr.bf16.gmra.mrb[4].mxu1 %v765_v20 }
  0x52   :  { %324 = vmatprep.mubr.bf16.mxu0 %v848_v0  ;;  %364 = vmatprep.mubr.bf16.mxu1 %v848_v0 }
  0x59   :  { %325 = vmatmul.mubr.bf16.gmra.mrb[8].mxu0 %v766_v21  ;;  %365 = vmatmul.mubr.bf16.gmra.mrb[8].mxu1 %v767_v22 }
  0x5a   :  { %334 = vmatprep.mubr.bf16.mxu0 %v848_v0  ;;  %374 = vmatprep.mubr.bf16.mxu1 %v848_v0 }
  0x61   :  { %335 = vmatmul.mubr.bf16.gmra.mrb[12].mxu0 %v768_v23  ;;  %375 = vmatmul.mubr.bf16.gmra.mrb[12].mxu1 %v769_v24 }
 0x11c   :  { %v306_v32 = vpop.f32.mrb[0].mxu0  ;;  %v346_v33 = vpop.f32.mrb[0].mxu1 }
 0x11d   :  { %v496_v34 = vadd.f32 %v908_v30, %v306_v32  ;;  %v512_v35 = vadd.f32 %v908_v30, %v346_v33  ;;  %v308_v36 = vpop.f32.mrb[1].mxu0  ;;  %v348_v37 = vpop.f32.mrb[1].mxu1 }
 0x11e   :  { %v497_v38 = vadd.f32 %v910_v31, %v308_v36  ;;  %v513_v39 = vadd.f32 %v910_v31, %v348_v37  ;;  %v310_v40 = vpop.f32.mrb[2].mxu0  ;;  %v350_v41 = vpop.f32.mrb[2].mxu1 }
 0x11f   :  { %v498_v42 = vadd.f32 %v908_v30, %v310_v40  ;;  %v514_v43 = vadd.f32 %v908_v30, %v350_v41  ;;  %v312_v44 = vpop.f32.mrb[3].mxu0  ;;  %v352_v45 = vpop.f32.mrb[3].mxu1 }
 0x120   :  { %v698_v46 = vpack.c.bf16 %v497_v38, %v496_v34  ;;  %v706_v47 = vpack.c.bf16 %v513_v39, %v512_v35  ;;  %v499_v48 = vadd.f32 %v910_v31, %v312_v44  ;;  %v515_v49 = vadd.f32 %v910_v31, %v352_v45 }
 0x122   :  { %624 = vst [vmem:[#allocation8] sm:$0xff] %v698_v46  ;;  %632 = vst [vmem:[#allocation8 + $0x40] sm:$0xff] %v706_v47  ;;  %v699_v50 = vpack.c.bf16 %v499_v48, %v498_v42  ;;  %v707_v51 = vpack.c.bf16 %v515_v49, %v514_v43 }
 0x124   :  { %625 = vst [vmem:[#allocation8 + $0x8] sm:$0xff] %v699_v50  ;;  %633 = vst [vmem:[#allocation8 + $0x48] sm:$0xff] %v707_v51  ;;  %v316_v52 = vpop.f32.mrb[4].mxu0  ;;  %v356_v53 = vpop.f32.mrb[4].mxu1 }
 0x125   :  { %v500_v54 = vadd.f32 %v908_v30, %v316_v52  ;;  %v516_v55 = vadd.f32 %v908_v30, %v356_v53  ;;  %v318_v56 = vpop.f32.mrb[5].mxu0  ;;  %v358_v57 = vpop.f32.mrb[5].mxu1 }
 0x126   :  { %v501_v58 = vadd.f32 %v910_v31, %v318_v56  ;;  %v517_v59 = vadd.f32 %v910_v31, %v358_v57  ;;  %v320_v60 = vpop.f32.mrb[6].mxu0  ;;  %v360_v61 = vpop.f32.mrb[6].mxu1 }
 0x127   :  { %v502_v62 = vadd.f32 %v908_v30, %v320_v60  ;;  %v518_v63 = vadd.f32 %v908_v30, %v360_v61  ;;  %v322_v0 = vpop.f32.mrb[7].mxu0  ;;  %v362_v1 = vpop.f32.mrb[7].mxu1 }
 0x128   :  { %v700_v2 = vpack.c.bf16 %v501_v58, %v500_v54  ;;  %v708_v3 = vpack.c.bf16 %v517_v59, %v516_v55  ;;  %v503_v4 = vadd.f32 %v910_v31, %v322_v0  ;;  %v519_v5 = vadd.f32 %v910_v31, %v362_v1 }
 0x12a   :  { %626 = vst [vmem:[#allocation8 + $0x10] sm:$0xff] %v700_v2  ;;  %634 = vst [vmem:[#allocation8 + $0x50] sm:$0xff] %v708_v3  ;;  %v701_v6 = vpack.c.bf16 %v503_v4, %v502_v62  ;;  %v709_v7 = vpack.c.bf16 %v519_v5, %v518_v63 }
 0x12c   :  { %627 = vst [vmem:[#allocation8 + $0x18] sm:$0xff] %v701_v6  ;;  %635 = vst [vmem:[#allocation8 + $0x58] sm:$0xff] %v709_v7  ;;  %v326_v8 = vpop.f32.mrb[8].mxu0  ;;  %v366_v9 = vpop.f32.mrb[8].mxu1 }
 0x12d   :  { %v504_v10 = vadd.f32 %v908_v30, %v326_v8  ;;  %v520_v11 = vadd.f32 %v908_v30, %v366_v9  ;;  %v328_v12 = vpop.f32.mrb[9].mxu0  ;;  %v368_v13 = vpop.f32.mrb[9].mxu1 }
 0x12e   :  { %v505_v14 = vadd.f32 %v910_v31, %v328_v12  ;;  %v521_v15 = vadd.f32 %v910_v31, %v368_v13  ;;  %v330_v16 = vpop.f32.mrb[10].mxu0  ;;  %v370_v17 = vpop.f32.mrb[10].mxu1 }
 0x12f   :  { %v506_v18 = vadd.f32 %v908_v30, %v330_v16  ;;  %v522_v19 = vadd.f32 %v908_v30, %v370_v17  ;;  %v332_v20 = vpop.f32.mrb[11].mxu0  ;;  %v372_v21 = vpop.f32.mrb[11].mxu1 }
 0x130   :  { %v702_v22 = vpack.c.bf16 %v505_v14, %v504_v10  ;;  %v710_v23 = vpack.c.bf16 %v521_v15, %v520_v11  ;;  %v507_v24 = vadd.f32 %v910_v31, %v332_v20  ;;  %v523_v25 = vadd.f32 %v910_v31, %v372_v21 }
 0x132   :  { %628 = vst [vmem:[#allocation8 + $0x20] sm:$0xff] %v702_v22  ;;  %636 = vst [vmem:[#allocation8 + $0x60] sm:$0xff] %v710_v23  ;;  %v703_v26 = vpack.c.bf16 %v507_v24, %v506_v18  ;;  %v711_v27 = vpack.c.bf16 %v523_v25, %v522_v19 }
 0x134   :  { %629 = vst [vmem:[#allocation8 + $0x28] sm:$0xff] %v703_v26  ;;  %637 = vst [vmem:[#allocation8 + $0x68] sm:$0xff] %v711_v27  ;;  %v336_v28 = vpop.f32.mrb[12].mxu0  ;;  %v376_v29 = vpop.f32.mrb[12].mxu1 }
 0x135   :  { %v508_v32 = vadd.f32 %v908_v30, %v336_v28  ;;  %v524_v33 = vadd.f32 %v908_v30, %v376_v29  ;;  %v338_v34 = vpop.f32.mrb[13].mxu0  ;;  %v378_v35 = vpop.f32.mrb[13].mxu1 }
 0x136   :  { %v509_v36 = vadd.f32 %v910_v31, %v338_v34  ;;  %v525_v37 = vadd.f32 %v910_v31, %v378_v35  ;;  %v340_v38 = vpop.f32.mrb[14].mxu0  ;;  %v380_v39 = vpop.f32.mrb[14].mxu1 }
 0x137   :  { %v510_v40 = vadd.f32 %v908_v30, %v340_v38  ;;  %v526_v41 = vadd.f32 %v908_v30, %v380_v39  ;;  %v342_v42 = vpop.f32.mrb[15].mxu0  ;;  %v382_v43 = vpop.f32.mrb[15].mxu1 }
 0x138   :  { %v704_v44 = vpack.c.bf16 %v509_v36, %v508_v32  ;;  %v712_v45 = vpack.c.bf16 %v525_v37, %v524_v33  ;;  %v511_v46 = vadd.f32 %v910_v31, %v342_v42  ;;  %v527_v47 = vadd.f32 %v910_v31, %v382_v43 }
 0x13a   :  { %630 = vst [vmem:[#allocation8 + $0x30] sm:$0xff] %v704_v44  ;;  %638 = vst [vmem:[#allocation8 + $0x70] sm:$0xff] %v712_v45  ;;  %v705_v48 = vpack.c.bf16 %v511_v46, %v510_v40  ;;  %v713_v49 = vpack.c.bf16 %v527_v47, %v526_v41 }
 0x13c   :  { %631 = vst [vmem:[#allocation8 + $0x38] sm:$0xff] %v705_v48  ;;  %639 = vst [vmem:[#allocation8 + $0x78] sm:$0xff] %v713_v49 }
 0x13d   :  { %825 = shalt.err (!%p822_p6)
}
 0x13e   :  { %s826_s17 = scalar_lea.hbm %s962_s3, 2048 }
 0x13f   :  { %p827_p7 = scmp.ne.s32.totalorder %s962_s3, %s826_s17  ;;  %p830_p8 = scmp.lt.u32.totalorder %s826_s17, %s962_s3 }
 0x141   :  { %p832_p9 = pnand %p830_p8, %p827_p7 }
 0x143   :  { %835 = shalt.err (!%p832_p9)
}
 0x144   :  { %651 = dma.vmem_to_hbm [thread:$0]  %s646_s13, 2048, %s962_s3, [#allocation5], %s846_s0, %s846_s0, %s847_s9  }
 0x145   :  { %840 = dma.done.wait [#allocation5], 2048  }
 0x146   :  { %841 = vsyncadd [#allocation5], 4294965248 }
 0x147   :  { %655 = vsyncpa [#allocation4], 1 }
 0x148   :  { %656 = vsyncpa [#allocation7], 1 }
 0x149   :  { %657 = vsyncpa [#allocation5], 1 }

</bundles_post_ra>
